<compile_context>
chip_gen: v7x
topology: tpu7x:2x2x1
jax: 0.10.0
libtpu: 0.0.40
codegen_flags: <defaults>
</compile_context>

<pallas_src>
import math

import jax
import jax.numpy as jnp
import numpy as np
from jax.experimental import pallas as pl
from jax.experimental.pallas import tpu as pltpu

NUM_HEADS = 4
D = 16          # input_size
N = 8           # number_of_events (sequence length)


def transformer_block_kernel(x_ref, whf_ref, wpack_ref, vecs_ref, out_ref):
    x = x_ref[0]                                     # [N, D] f32 (one sequence)
    n = x.shape[0]

    vecs = vecs_ref[...]                             # [8, 4D] packed small vectors
    bh    = vecs[0:1, :]                             # [1, 4D]
    br    = vecs[1:2, :D]                            # [1, D]
    b1    = vecs[2:3, :D]
    b2    = vecs[3:4, :D]
    gamma = vecs[4:5, :D]
    beta  = vecs[5:6, :D]

    def layer_norm(v):
        # single-pass: var = E[v^2] - E[v]^2 (biased, like torch.nn.LayerNorm)
        m1 = jnp.mean(v, axis=-1, keepdims=True)
        m2 = jnp.mean(v * v, axis=-1, keepdims=True)
        var = m2 - m1 * m1
        return (v - m1) * jax.lax.rsqrt(var + 1e-5) * gamma + beta

    # heads projection with the repeat folded into the weight:
    # rep @ wh == x @ (wh[0:D] + wh[D:2D] + wh[2D:3D] + wh[3D:4D])
    proj = jnp.dot(x, whf_ref[...],
                   preferred_element_type=jnp.float32) + bh          # [N, 4D]

    # causal mask: row i attends to columns 0..i
    row = jax.lax.broadcasted_iota(jnp.int32, (n, n), 0)
    col = jax.lax.broadcasted_iota(jnp.int32, (n, n), 1)
    causal = col <= row
    neg_big = jnp.float32(-1e30)                     # finite: no inf-inf NaN risk
    inv_sqrt_d = jnp.float32(1.0 / math.sqrt(D))

    # attention sublayer + reducer, accumulated over heads (no concat)
    acc = jnp.zeros((n, D), jnp.float32)
    for h in range(NUM_HEADS):                       # static loop over heads
        hs = proj[:, h * D:(h + 1) * D]              # [N, D]
        # hs @ hs^T without an explicit transpose (contract dim 1 of both)
        logits = jax.lax.dot_general(
            hs, hs, (((1,), (1,)), ((), ())),
            preferred_element_type=jnp.float32) * inv_sqrt_d         # [N, N]
        logits = jnp.where(causal, logits, neg_big)
        m = jnp.max(logits, axis=-1, keepdims=True)
        p = jnp.exp(logits - m)
        p = p * pl.reciprocal(jnp.sum(p, axis=-1, keepdims=True), approx=True)
        attn = jnp.dot(p, hs, preferred_element_type=jnp.float32)    # [N, D]
        head_out = layer_norm(attn + x)              # residual with ORIGINAL x
        # linear_reducer as per-head accumulation: recon @ wr == sum_h ho_h @ wr_h
        wr_h = wpack_ref[h * D:(h + 1) * D, :]       # [D, D], sublane-aligned
        acc = acc + jnp.dot(head_out, wr_h, preferred_element_type=jnp.float32)

    a = acc + br                                     # attention_sublayer_output

    # ff_block: Linear -> ReLU -> Linear
    w1 = wpack_ref[4 * D:5 * D, :]                   # [D, D]
    w2 = wpack_ref[5 * D:6 * D, :]                   # [D, D]
    h1 = jnp.maximum(
        jnp.dot(a, w1, preferred_element_type=jnp.float32) + b1, 0.0)
    ff = jnp.dot(h1, w2, preferred_element_type=jnp.float32) + b2

    out_ref[0] = layer_norm(ff + a)


def pack_params(params):
    """One-time host-side weight prep (fold repeat, pack small tensors)."""
    (wh, bh, wr, br, w1, b1, w2, b2, gamma, beta) = params
    # Fold the input repeat into the heads weight.
    whf = wh[0:D] + wh[D:2 * D] + wh[2 * D:3 * D] + wh[3 * D:4 * D]   # [D, 4D]
    # Pack reducer + FF weights into one [6D, D] slab (sublane-aligned slices).
    wpack = jnp.concatenate([wr, w1, w2], axis=0)                     # [6D, D]
    # Pack the six small vectors into a single [8, 4D] slab (one DMA descriptor).
    vecs = jnp.zeros((8, NUM_HEADS * D), jnp.float32)
    vecs = vecs.at[0, :].set(bh[0])
    vecs = vecs.at[1, :D].set(br[0])
    vecs = vecs.at[2, :D].set(b1[0])
    vecs = vecs.at[3, :D].set(b2[0])
    vecs = vecs.at[4, :D].set(gamma[0])
    vecs = vecs.at[5, :D].set(beta[0])
    return whf, wpack, vecs


def transformer_block_batched(x, packed):
    """x: [B, N, D]; processes B independent sequences, grid parallel over B."""
    whf, wpack, vecs = packed
    B = x.shape[0]
    grid_spec = pltpu.PrefetchScalarGridSpec(
        num_scalar_prefetch=0,
        grid=(B,),
        in_specs=[
            pl.BlockSpec((1, N, D), lambda b: (b, 0, 0)),             # x
            pl.BlockSpec((D, NUM_HEADS * D), lambda b: (0, 0)),       # whf
            pl.BlockSpec((6 * D, D), lambda b: (0, 0)),               # [wr;w1;w2]
            pl.BlockSpec((8, NUM_HEADS * D), lambda b: (0, 0)),       # vecs
        ],
        out_specs=pl.BlockSpec((1, N, D), lambda b: (b, 0, 0)),
    )
    return pl.pallas_call(
        transformer_block_kernel,
        out_shape=jax.ShapeDtypeStruct((B, N, D), jnp.float32),
        grid_spec=grid_spec,
        compiler_params=pltpu.CompilerParams(
            dimension_semantics=("parallel",)),       # v7x: batch across both TCs
    )(x, whf, wpack, vecs)


def transformer_block(x, packed):
    """Original module signature: x is [num_events, input_size]."""
    return transformer_block_batched(x[None], packed)[0]


def init_params(key):
    """Deterministic init mimicking PyTorch nn.Linear defaults (uniform ±1/sqrt(fan_in)).
    Weights are stored pre-transposed as [in, out]; biases/LN params as [1, out]."""
    def linear(key, fan_in, fan_out):
        k1, k2 = jax.random.split(key)
        bound = 1.0 / math.sqrt(fan_in)
        w = jax.random.uniform(k1, (fan_in, fan_out), jnp.float32, -bound, bound)
        b = jax.random.uniform(k2, (1, fan_out), jnp.float32, -bound, bound)
        return w, b

    ks = jax.random.split(key, 4)
    wh, bh = linear(ks[0], D * NUM_HEADS, D * NUM_HEADS)   # heads
    wr, br = linear(ks[1], D * NUM_HEADS, D)               # linear_reducer
    w1, b1 = linear(ks[2], D, D)                           # ff first_layer
    w2, b2 = linear(ks[3], D, D)                           # ff second_layer
    gamma = jnp.ones((1, D), jnp.float32)                  # LayerNorm weight
    beta = jnp.zeros((1, D), jnp.float32)                  # LayerNorm bias
    return (wh, bh, wr, br, w1, b1, w2, b2, gamma, beta)


def reference(x, params):
    """Pure-JAX reference mirroring the PyTorch forward pass (one sequence)."""
    (wh, bh, wr, br, w1, b1, w2, b2, gamma, beta) = params

    def ln(v):
        mu = jnp.mean(v, axis=-1, keepdims=True)
        var = jnp.mean((v - mu) ** 2, axis=-1, keepdims=True)
        return (v - mu) / jnp.sqrt(var + 1e-5) * gamma + beta

    n = x.shape[0]
    rep = jnp.tile(x, (1, NUM_HEADS))
    proj = rep @ wh + bh
    recons = []
    for h in range(NUM_HEADS):
        hs = proj[:, h * D:(h + 1) * D]
        ip = hs @ hs.T / math.sqrt(D)
        mask = jnp.arange(n)[None, :] <= jnp.arange(n)[:, None]
        ip = jnp.where(mask, ip, -jnp.inf)
        p = jax.nn.softmax(ip, axis=-1)
        recons.append(ln(p @ hs + x))
    recon = jnp.concatenate(recons, axis=1)
    a = recon @ wr + br
    ff = jnp.maximum(a @ w1 + b1, 0.0) @ w2 + b2
    return ln(ff + a)


if __name__ == "__main__":
    key = jax.random.PRNGKey(0)
    kx, kp = jax.random.split(key)

    B = 8                                   # batch of independent sequences
    x = jax.random.normal(kx, (B, N, D), jnp.float32)
    params = init_params(kp)
    packed = pack_params(params)

    # batched path (the performance path)
    out = jax.block_until_ready(transformer_block_batched(x, packed))
    ref = jax.block_until_ready(jax.vmap(lambda xi: reference(xi, params))(x))
    np.testing.assert_allclose(np.asarray(out), np.asarray(ref),
                               rtol=1e-2, atol=1e-2)

    # single-sequence path (exactly the original module's forward signature)
    out1 = jax.block_until_ready(transformer_block(x[0], packed))
    np.testing.assert_allclose(np.asarray(out1), np.asarray(ref[0]),
                               rtol=1e-2, atol=1e-2)

    print("KERNEL_OK")
</pallas_src>

<mosaic_0001>
module attributes {stable_mosaic.version = 11 : i64} {
  func.func @transformer_block_kernel(%arg0: i32, %arg1: memref<1x8x16xf32, #tpu.memory_space<vmem>>, %arg2: memref<16x64xf32, #tpu.memory_space<vmem>>, %arg3: memref<96x16xf32, #tpu.memory_space<vmem>>, %arg4: memref<8x64xf32, #tpu.memory_space<vmem>>, %arg5: memref<1x8x16xf32, #tpu.memory_space<vmem>>) attributes {dimension_semantics = [#tpu.dimension_semantics<parallel>], iteration_bounds = array<i64: 8>, scalar_prefetch = 0 : i64, scratch_operands = 0 : i64, tpu.core_type = #tpu.core_type<tc>, window_params = [{transform_indices = @transform_0, window_bounds = array<i64: 1, 8, 16>}, {pipeline_mode = #tpu.pipeline_mode<synchronous>, transform_indices = @transform_1, window_bounds = array<i64: 16, 64>}, {pipeline_mode = #tpu.pipeline_mode<synchronous>, transform_indices = @transform_2, window_bounds = array<i64: 96, 16>}, {pipeline_mode = #tpu.pipeline_mode<synchronous>, transform_indices = @transform_3, window_bounds = array<i64: 8, 64>}, {transform_indices = @transform_4, window_bounds = array<i64: 1, 8, 16>}]} {
    %c0 = arith.constant 0 : index
    %c0_0 = arith.constant 0 : index
    %c0_1 = arith.constant 0 : index
    %0 = vector.load %arg1[%c0, %c0_0, %c0_1] : memref<1x8x16xf32, #tpu.memory_space<vmem>>, vector<1x8x16xf32>
    %1 = vector.shape_cast %0 : vector<1x8x16xf32> to vector<8x16xf32>
    %c0_2 = arith.constant 0 : index
    %c0_3 = arith.constant 0 : index
    %2 = vector.load %arg4[%c0_2, %c0_3] : memref<8x64xf32, #tpu.memory_space<vmem>>, vector<8x64xf32>
    %3 = vector.extract_strided_slice %2 {offsets = [0, 0], sizes = [1, 64], strides = [1, 1]} : vector<8x64xf32> to vector<1x64xf32>
    %4 = vector.extract_strided_slice %2 {offsets = [1, 0], sizes = [1, 16], strides = [1, 1]} : vector<8x64xf32> to vector<1x16xf32>
    %5 = vector.extract_strided_slice %2 {offsets = [2, 0], sizes = [1, 16], strides = [1, 1]} : vector<8x64xf32> to vector<1x16xf32>
    %6 = vector.extract_strided_slice %2 {offsets = [3, 0], sizes = [1, 16], strides = [1, 1]} : vector<8x64xf32> to vector<1x16xf32>
    %7 = vector.extract_strided_slice %2 {offsets = [4, 0], sizes = [1, 16], strides = [1, 1]} : vector<8x64xf32> to vector<1x16xf32>
    %8 = vector.extract_strided_slice %2 {offsets = [5, 0], sizes = [1, 16], strides = [1, 1]} : vector<8x64xf32> to vector<1x16xf32>
    %c0_4 = arith.constant 0 : index
    %c0_5 = arith.constant 0 : index
    %9 = vector.load %arg2[%c0_4, %c0_5] : memref<16x64xf32, #tpu.memory_space<vmem>>, vector<16x64xf32>
    %cst = arith.constant dense<0.000000e+00> : vector<8x64xf32>
    %10 = tpu.matmul %1, %9, %cst {dimension_numbers = #tpu.dot_dimension_numbers<[1], [0], [0], [1], [0, 0, 1, 1], [], []>} : vector<8x16xf32>, vector<16x64xf32>, vector<8x64xf32> -> vector<8x64xf32>
    %11 = vector.broadcast %3 : vector<1x64xf32> to vector<8x64xf32>
    %12 = arith.addf %10, %11 : vector<8x64xf32>
    %13 = tpu.iota {dimensions = array<i32: 0>} : vector<8x8xi32>
    %14 = tpu.iota {dimensions = array<i32: 1>} : vector<8x8xi32>
    %15 = arith.cmpi sle, %14, %13 : vector<8x8xi32>
    %cst_6 = arith.constant 0.000000e+00 : f32
    %16 = vector.broadcast %cst_6 : f32 to vector<8x16xf32>
    %17 = vector.extract_strided_slice %12 {offsets = [0, 0], sizes = [8, 16], strides = [1, 1]} : vector<8x64xf32> to vector<8x16xf32>
    %cst_7 = arith.constant dense<0.000000e+00> : vector<8x8xf32>
    %18 = tpu.matmul %17, %17, %cst_7 {dimension_numbers = #tpu.dot_dimension_numbers<[1], [1], [0], [0], [0, 0, 1, 0], [], []>} : vector<8x16xf32>, vector<8x16xf32>, vector<8x8xf32> -> vector<8x8xf32>
    %cst_8 = arith.constant 2.500000e-01 : f32
    %19 = vector.broadcast %cst_8 : f32 to vector<8x8xf32>
    %20 = arith.mulf %18, %19 : vector<8x8xf32>
    %cst_9 = arith.constant -1.000000e+30 : f32
    %21 = vector.broadcast %cst_9 : f32 to vector<8x8xf32>
    %22 = arith.select %15, %20, %21 : vector<8x8xi1>, vector<8x8xf32>
    %cst_10 = arith.constant dense<0xFF800000> : vector<8xf32>
    %23 = vector.multi_reduction <maximumf>, %22, %cst_10 [1] : vector<8x8xf32> to vector<8xf32>
    %24 = vector.shape_cast %23 : vector<8xf32> to vector<8x1xf32>
    %25 = vector.broadcast %24 : vector<8x1xf32> to vector<8x8xf32>
    %26 = arith.subf %22, %25 : vector<8x8xf32>
    %27 = math.exp %26 : vector<8x8xf32>
    %cst_11 = arith.constant dense<0.000000e+00> : vector<8xf32>
    %28 = vector.multi_reduction <add>, %27, %cst_11 [1] : vector<8x8xf32> to vector<8xf32>
    %29 = vector.shape_cast %28 : vector<8xf32> to vector<8x1xf32>
    %30 = tpu.reciprocal %29 {approx = true} : vector<8x1xf32> -> vector<8x1xf32>
    %31 = vector.broadcast %30 : vector<8x1xf32> to vector<8x8xf32>
    %32 = arith.mulf %27, %31 : vector<8x8xf32>
    %cst_12 = arith.constant dense<0.000000e+00> : vector<8x16xf32>
    %33 = tpu.matmul %32, %17, %cst_12 {dimension_numbers = #tpu.dot_dimension_numbers<[1], [0], [0], [1], [0, 0, 1, 1], [], []>} : vector<8x8xf32>, vector<8x16xf32>, vector<8x16xf32> -> vector<8x16xf32>
    %34 = arith.addf %33, %1 : vector<8x16xf32>
    %cst_13 = arith.constant dense<0.000000e+00> : vector<8xf32>
    %35 = vector.multi_reduction <add>, %34, %cst_13 [1] : vector<8x16xf32> to vector<8xf32>
    %36 = vector.shape_cast %35 : vector<8xf32> to vector<8x1xf32>
    %cst_14 = arith.constant 1.600000e+01 : f32
    %37 = vector.broadcast %cst_14 : f32 to vector<8x1xf32>
    %38 = arith.divf %36, %37 : vector<8x1xf32>
    %39 = arith.mulf %34, %34 : vector<8x16xf32>
    %cst_15 = arith.constant dense<0.000000e+00> : vector<8xf32>
    %40 = vector.multi_reduction <add>, %39, %cst_15 [1] : vector<8x16xf32> to vector<8xf32>
    %41 = vector.shape_cast %40 : vector<8xf32> to vector<8x1xf32>
    %cst_16 = arith.constant 1.600000e+01 : f32
    %42 = vector.broadcast %cst_16 : f32 to vector<8x1xf32>
    %43 = arith.divf %41, %42 : vector<8x1xf32>
    %44 = arith.mulf %38, %38 : vector<8x1xf32>
    %45 = arith.subf %43, %44 : vector<8x1xf32>
    %46 = vector.broadcast %38 : vector<8x1xf32> to vector<8x16xf32>
    %47 = arith.subf %34, %46 : vector<8x16xf32>
    %cst_17 = arith.constant 9.99999974E-6 : f32
    %48 = vector.broadcast %cst_17 : f32 to vector<8x1xf32>
    %49 = arith.addf %45, %48 : vector<8x1xf32>
    %50 = math.rsqrt %49 : vector<8x1xf32>
    %51 = vector.broadcast %50 : vector<8x1xf32> to vector<8x16xf32>
    %52 = arith.mulf %47, %51 : vector<8x16xf32>
    %53 = vector.broadcast %7 : vector<1x16xf32> to vector<8x16xf32>
    %54 = arith.mulf %52, %53 : vector<8x16xf32>
    %55 = vector.broadcast %8 : vector<1x16xf32> to vector<8x16xf32>
    %56 = arith.addf %54, %55 : vector<8x16xf32>
    %c0_18 = arith.constant 0 : index
    %c0_19 = arith.constant 0 : index
    %57 = vector.load %arg3[%c0_18, %c0_19] : memref<96x16xf32, #tpu.memory_space<vmem>>, vector<16x16xf32>
    %cst_20 = arith.constant dense<0.000000e+00> : vector<8x16xf32>
    %58 = tpu.matmul %56, %57, %cst_20 {dimension_numbers = #tpu.dot_dimension_numbers<[1], [0], [0], [1], [0, 0, 1, 1], [], []>} : vector<8x16xf32>, vector<16x16xf32>, vector<8x16xf32> -> vector<8x16xf32>
    %59 = arith.addf %16, %58 : vector<8x16xf32>
    %60 = vector.extract_strided_slice %12 {offsets = [0, 16], sizes = [8, 16], strides = [1, 1]} : vector<8x64xf32> to vector<8x16xf32>
    %cst_21 = arith.constant dense<0.000000e+00> : vector<8x8xf32>
    %61 = tpu.matmul %60, %60, %cst_21 {dimension_numbers = #tpu.dot_dimension_numbers<[1], [1], [0], [0], [0, 0, 1, 0], [], []>} : vector<8x16xf32>, vector<8x16xf32>, vector<8x8xf32> -> vector<8x8xf32>
    %cst_22 = arith.constant 2.500000e-01 : f32
    %62 = vector.broadcast %cst_22 : f32 to vector<8x8xf32>
    %63 = arith.mulf %61, %62 : vector<8x8xf32>
    %cst_23 = arith.constant -1.000000e+30 : f32
    %64 = vector.broadcast %cst_23 : f32 to vector<8x8xf32>
    %65 = arith.select %15, %63, %64 : vector<8x8xi1>, vector<8x8xf32>
    %cst_24 = arith.constant dense<0xFF800000> : vector<8xf32>
    %66 = vector.multi_reduction <maximumf>, %65, %cst_24 [1] : vector<8x8xf32> to vector<8xf32>
    %67 = vector.shape_cast %66 : vector<8xf32> to vector<8x1xf32>
    %68 = vector.broadcast %67 : vector<8x1xf32> to vector<8x8xf32>
    %69 = arith.subf %65, %68 : vector<8x8xf32>
    %70 = math.exp %69 : vector<8x8xf32>
    %cst_25 = arith.constant dense<0.000000e+00> : vector<8xf32>
    %71 = vector.multi_reduction <add>, %70, %cst_25 [1] : vector<8x8xf32> to vector<8xf32>
    %72 = vector.shape_cast %71 : vector<8xf32> to vector<8x1xf32>
    %73 = tpu.reciprocal %72 {approx = true} : vector<8x1xf32> -> vector<8x1xf32>
    %74 = vector.broadcast %73 : vector<8x1xf32> to vector<8x8xf32>
    %75 = arith.mulf %70, %74 : vector<8x8xf32>
    %cst_26 = arith.constant dense<0.000000e+00> : vector<8x16xf32>
    %76 = tpu.matmul %75, %60, %cst_26 {dimension_numbers = #tpu.dot_dimension_numbers<[1], [0], [0], [1], [0, 0, 1, 1], [], []>} : vector<8x8xf32>, vector<8x16xf32>, vector<8x16xf32> -> vector<8x16xf32>
    %77 = arith.addf %76, %1 : vector<8x16xf32>
    %cst_27 = arith.constant dense<0.000000e+00> : vector<8xf32>
    %78 = vector.multi_reduction <add>, %77, %cst_27 [1] : vector<8x16xf32> to vector<8xf32>
    %79 = vector.shape_cast %78 : vector<8xf32> to vector<8x1xf32>
    %cst_28 = arith.constant 1.600000e+01 : f32
    %80 = vector.broadcast %cst_28 : f32 to vector<8x1xf32>
    %81 = arith.divf %79, %80 : vector<8x1xf32>
    %82 = arith.mulf %77, %77 : vector<8x16xf32>
    %cst_29 = arith.constant dense<0.000000e+00> : vector<8xf32>
    %83 = vector.multi_reduction <add>, %82, %cst_29 [1] : vector<8x16xf32> to vector<8xf32>
    %84 = vector.shape_cast %83 : vector<8xf32> to vector<8x1xf32>
    %cst_30 = arith.constant 1.600000e+01 : f32
    %85 = vector.broadcast %cst_30 : f32 to vector<8x1xf32>
    %86 = arith.divf %84, %85 : vector<8x1xf32>
    %87 = arith.mulf %81, %81 : vector<8x1xf32>
    %88 = arith.subf %86, %87 : vector<8x1xf32>
    %89 = vector.broadcast %81 : vector<8x1xf32> to vector<8x16xf32>
    %90 = arith.subf %77, %89 : vector<8x16xf32>
    %cst_31 = arith.constant 9.99999974E-6 : f32
    %91 = vector.broadcast %cst_31 : f32 to vector<8x1xf32>
    %92 = arith.addf %88, %91 : vector<8x1xf32>
    %93 = math.rsqrt %92 : vector<8x1xf32>
    %94 = vector.broadcast %93 : vector<8x1xf32> to vector<8x16xf32>
    %95 = arith.mulf %90, %94 : vector<8x16xf32>
    %96 = vector.broadcast %7 : vector<1x16xf32> to vector<8x16xf32>
    %97 = arith.mulf %95, %96 : vector<8x16xf32>
    %98 = vector.broadcast %8 : vector<1x16xf32> to vector<8x16xf32>
    %99 = arith.addf %97, %98 : vector<8x16xf32>
    %c16 = arith.constant 16 : index
    %c0_32 = arith.constant 0 : index
    %100 = vector.load %arg3[%c16, %c0_32] : memref<96x16xf32, #tpu.memory_space<vmem>>, vector<16x16xf32>
    %cst_33 = arith.constant dense<0.000000e+00> : vector<8x16xf32>
    %101 = tpu.matmul %99, %100, %cst_33 {dimension_numbers = #tpu.dot_dimension_numbers<[1], [0], [0], [1], [0, 0, 1, 1], [], []>} : vector<8x16xf32>, vector<16x16xf32>, vector<8x16xf32> -> vector<8x16xf32>
    %102 = arith.addf %59, %101 : vector<8x16xf32>
    %103 = vector.extract_strided_slice %12 {offsets = [0, 32], sizes = [8, 16], strides = [1, 1]} : vector<8x64xf32> to vector<8x16xf32>
    %cst_34 = arith.constant dense<0.000000e+00> : vector<8x8xf32>
    %104 = tpu.matmul %103, %103, %cst_34 {dimension_numbers = #tpu.dot_dimension_numbers<[1], [1], [0], [0], [0, 0, 1, 0], [], []>} : vector<8x16xf32>, vector<8x16xf32>, vector<8x8xf32> -> vector<8x8xf32>
    %cst_35 = arith.constant 2.500000e-01 : f32
    %105 = vector.broadcast %cst_35 : f32 to vector<8x8xf32>
    %106 = arith.mulf %104, %105 : vector<8x8xf32>
    %cst_36 = arith.constant -1.000000e+30 : f32
    %107 = vector.broadcast %cst_36 : f32 to vector<8x8xf32>
    %108 = arith.select %15, %106, %107 : vector<8x8xi1>, vector<8x8xf32>
    %cst_37 = arith.constant dense<0xFF800000> : vector<8xf32>
    %109 = vector.multi_reduction <maximumf>, %108, %cst_37 [1] : vector<8x8xf32> to vector<8xf32>
    %110 = vector.shape_cast %109 : vector<8xf32> to vector<8x1xf32>
    %111 = vector.broadcast %110 : vector<8x1xf32> to vector<8x8xf32>
    %112 = arith.subf %108, %111 : vector<8x8xf32>
    %113 = math.exp %112 : vector<8x8xf32>
    %cst_38 = arith.constant dense<0.000000e+00> : vector<8xf32>
    %114 = vector.multi_reduction <add>, %113, %cst_38 [1] : vector<8x8xf32> to vector<8xf32>
    %115 = vector.shape_cast %114 : vector<8xf32> to vector<8x1xf32>
    %116 = tpu.reciprocal %115 {approx = true} : vector<8x1xf32> -> vector<8x1xf32>
    %117 = vector.broadcast %116 : vector<8x1xf32> to vector<8x8xf32>
    %118 = arith.mulf %113, %117 : vector<8x8xf32>
    %cst_39 = arith.constant dense<0.000000e+00> : vector<8x16xf32>
    %119 = tpu.matmul %118, %103, %cst_39 {dimension_numbers = #tpu.dot_dimension_numbers<[1], [0], [0], [1], [0, 0, 1, 1], [], []>} : vector<8x8xf32>, vector<8x16xf32>, vector<8x16xf32> -> vector<8x16xf32>
    %120 = arith.addf %119, %1 : vector<8x16xf32>
    %cst_40 = arith.constant dense<0.000000e+00> : vector<8xf32>
    %121 = vector.multi_reduction <add>, %120, %cst_40 [1] : vector<8x16xf32> to vector<8xf32>
    %122 = vector.shape_cast %121 : vector<8xf32> to vector<8x1xf32>
    %cst_41 = arith.constant 1.600000e+01 : f32
    %123 = vector.broadcast %cst_41 : f32 to vector<8x1xf32>
    %124 = arith.divf %122, %123 : vector<8x1xf32>
    %125 = arith.mulf %120, %120 : vector<8x16xf32>
    %cst_42 = arith.constant dense<0.000000e+00> : vector<8xf32>
    %126 = vector.multi_reduction <add>, %125, %cst_42 [1] : vector<8x16xf32> to vector<8xf32>
    %127 = vector.shape_cast %126 : vector<8xf32> to vector<8x1xf32>
    %cst_43 = arith.constant 1.600000e+01 : f32
    %128 = vector.broadcast %cst_43 : f32 to vector<8x1xf32>
    %129 = arith.divf %127, %128 : vector<8x1xf32>
    %130 = arith.mulf %124, %124 : vector<8x1xf32>
    %131 = arith.subf %129, %130 : vector<8x1xf32>
    %132 = vector.broadcast %124 : vector<8x1xf32> to vector<8x16xf32>
    %133 = arith.subf %120, %132 : vector<8x16xf32>
    %cst_44 = arith.constant 9.99999974E-6 : f32
    %134 = vector.broadcast %cst_44 : f32 to vector<8x1xf32>
    %135 = arith.addf %131, %134 : vector<8x1xf32>
    %136 = math.rsqrt %135 : vector<8x1xf32>
    %137 = vector.broadcast %136 : vector<8x1xf32> to vector<8x16xf32>
    %138 = arith.mulf %133, %137 : vector<8x16xf32>
    %139 = vector.broadcast %7 : vector<1x16xf32> to vector<8x16xf32>
    %140 = arith.mulf %138, %139 : vector<8x16xf32>
    %141 = vector.broadcast %8 : vector<1x16xf32> to vector<8x16xf32>
    %142 = arith.addf %140, %141 : vector<8x16xf32>
    %c32 = arith.constant 32 : index
    %c0_45 = arith.constant 0 : index
    %143 = vector.load %arg3[%c32, %c0_45] : memref<96x16xf32, #tpu.memory_space<vmem>>, vector<16x16xf32>
    %cst_46 = arith.constant dense<0.000000e+00> : vector<8x16xf32>
    %144 = tpu.matmul %142, %143, %cst_46 {dimension_numbers = #tpu.dot_dimension_numbers<[1], [0], [0], [1], [0, 0, 1, 1], [], []>} : vector<8x16xf32>, vector<16x16xf32>, vector<8x16xf32> -> vector<8x16xf32>
    %145 = arith.addf %102, %144 : vector<8x16xf32>
    %146 = vector.extract_strided_slice %12 {offsets = [0, 48], sizes = [8, 16], strides = [1, 1]} : vector<8x64xf32> to vector<8x16xf32>
    %cst_47 = arith.constant dense<0.000000e+00> : vector<8x8xf32>
    %147 = tpu.matmul %146, %146, %cst_47 {dimension_numbers = #tpu.dot_dimension_numbers<[1], [1], [0], [0], [0, 0, 1, 0], [], []>} : vector<8x16xf32>, vector<8x16xf32>, vector<8x8xf32> -> vector<8x8xf32>
    %cst_48 = arith.constant 2.500000e-01 : f32
    %148 = vector.broadcast %cst_48 : f32 to vector<8x8xf32>
    %149 = arith.mulf %147, %148 : vector<8x8xf32>
    %cst_49 = arith.constant -1.000000e+30 : f32
    %150 = vector.broadcast %cst_49 : f32 to vector<8x8xf32>
    %151 = arith.select %15, %149, %150 : vector<8x8xi1>, vector<8x8xf32>
    %cst_50 = arith.constant dense<0xFF800000> : vector<8xf32>
    %152 = vector.multi_reduction <maximumf>, %151, %cst_50 [1] : vector<8x8xf32> to vector<8xf32>
    %153 = vector.shape_cast %152 : vector<8xf32> to vector<8x1xf32>
    %154 = vector.broadcast %153 : vector<8x1xf32> to vector<8x8xf32>
    %155 = arith.subf %151, %154 : vector<8x8xf32>
    %156 = math.exp %155 : vector<8x8xf32>
    %cst_51 = arith.constant dense<0.000000e+00> : vector<8xf32>
    %157 = vector.multi_reduction <add>, %156, %cst_51 [1] : vector<8x8xf32> to vector<8xf32>
    %158 = vector.shape_cast %157 : vector<8xf32> to vector<8x1xf32>
    %159 = tpu.reciprocal %158 {approx = true} : vector<8x1xf32> -> vector<8x1xf32>
    %160 = vector.broadcast %159 : vector<8x1xf32> to vector<8x8xf32>
    %161 = arith.mulf %156, %160 : vector<8x8xf32>
    %cst_52 = arith.constant dense<0.000000e+00> : vector<8x16xf32>
    %162 = tpu.matmul %161, %146, %cst_52 {dimension_numbers = #tpu.dot_dimension_numbers<[1], [0], [0], [1], [0, 0, 1, 1], [], []>} : vector<8x8xf32>, vector<8x16xf32>, vector<8x16xf32> -> vector<8x16xf32>
    %163 = arith.addf %162, %1 : vector<8x16xf32>
    %cst_53 = arith.constant dense<0.000000e+00> : vector<8xf32>
    %164 = vector.multi_reduction <add>, %163, %cst_53 [1] : vector<8x16xf32> to vector<8xf32>
    %165 = vector.shape_cast %164 : vector<8xf32> to vector<8x1xf32>
    %cst_54 = arith.constant 1.600000e+01 : f32
    %166 = vector.broadcast %cst_54 : f32 to vector<8x1xf32>
    %167 = arith.divf %165, %166 : vector<8x1xf32>
    %168 = arith.mulf %163, %163 : vector<8x16xf32>
    %cst_55 = arith.constant dense<0.000000e+00> : vector<8xf32>
    %169 = vector.multi_reduction <add>, %168, %cst_55 [1] : vector<8x16xf32> to vector<8xf32>
    %170 = vector.shape_cast %169 : vector<8xf32> to vector<8x1xf32>
    %cst_56 = arith.constant 1.600000e+01 : f32
    %171 = vector.broadcast %cst_56 : f32 to vector<8x1xf32>
    %172 = arith.divf %170, %171 : vector<8x1xf32>
    %173 = arith.mulf %167, %167 : vector<8x1xf32>
    %174 = arith.subf %172, %173 : vector<8x1xf32>
    %175 = vector.broadcast %167 : vector<8x1xf32> to vector<8x16xf32>
    %176 = arith.subf %163, %175 : vector<8x16xf32>
    %cst_57 = arith.constant 9.99999974E-6 : f32
    %177 = vector.broadcast %cst_57 : f32 to vector<8x1xf32>
    %178 = arith.addf %174, %177 : vector<8x1xf32>
    %179 = math.rsqrt %178 : vector<8x1xf32>
    %180 = vector.broadcast %179 : vector<8x1xf32> to vector<8x16xf32>
    %181 = arith.mulf %176, %180 : vector<8x16xf32>
    %182 = vector.broadcast %7 : vector<1x16xf32> to vector<8x16xf32>
    %183 = arith.mulf %181, %182 : vector<8x16xf32>
    %184 = vector.broadcast %8 : vector<1x16xf32> to vector<8x16xf32>
    %185 = arith.addf %183, %184 : vector<8x16xf32>
    %c48 = arith.constant 48 : index
    %c0_58 = arith.constant 0 : index
    %186 = vector.load %arg3[%c48, %c0_58] : memref<96x16xf32, #tpu.memory_space<vmem>>, vector<16x16xf32>
    %cst_59 = arith.constant dense<0.000000e+00> : vector<8x16xf32>
    %187 = tpu.matmul %185, %186, %cst_59 {dimension_numbers = #tpu.dot_dimension_numbers<[1], [0], [0], [1], [0, 0, 1, 1], [], []>} : vector<8x16xf32>, vector<16x16xf32>, vector<8x16xf32> -> vector<8x16xf32>
    %188 = arith.addf %145, %187 : vector<8x16xf32>
    %189 = vector.broadcast %4 : vector<1x16xf32> to vector<8x16xf32>
    %190 = arith.addf %188, %189 : vector<8x16xf32>
    %c64 = arith.constant 64 : index
    %c0_60 = arith.constant 0 : index
    %191 = vector.load %arg3[%c64, %c0_60] : memref<96x16xf32, #tpu.memory_space<vmem>>, vector<16x16xf32>
    %c80 = arith.constant 80 : index
    %c0_61 = arith.constant 0 : index
    %192 = vector.load %arg3[%c80, %c0_61] : memref<96x16xf32, #tpu.memory_space<vmem>>, vector<16x16xf32>
    %cst_62 = arith.constant dense<0.000000e+00> : vector<8x16xf32>
    %193 = tpu.matmul %190, %191, %cst_62 {dimension_numbers = #tpu.dot_dimension_numbers<[1], [0], [0], [1], [0, 0, 1, 1], [], []>} : vector<8x16xf32>, vector<16x16xf32>, vector<8x16xf32> -> vector<8x16xf32>
    %194 = vector.broadcast %5 : vector<1x16xf32> to vector<8x16xf32>
    %195 = arith.addf %193, %194 : vector<8x16xf32>
    %cst_63 = arith.constant 0.000000e+00 : f32
    %196 = vector.broadcast %cst_63 : f32 to vector<8x16xf32>
    %197 = arith.maximumf %195, %196 : vector<8x16xf32>
    %cst_64 = arith.constant dense<0.000000e+00> : vector<8x16xf32>
    %198 = tpu.matmul %197, %192, %cst_64 {dimension_numbers = #tpu.dot_dimension_numbers<[1], [0], [0], [1], [0, 0, 1, 1], [], []>} : vector<8x16xf32>, vector<16x16xf32>, vector<8x16xf32> -> vector<8x16xf32>
    %199 = vector.broadcast %6 : vector<1x16xf32> to vector<8x16xf32>
    %200 = arith.addf %198, %199 : vector<8x16xf32>
    %201 = arith.addf %200, %190 : vector<8x16xf32>
    %cst_65 = arith.constant dense<0.000000e+00> : vector<8xf32>
    %202 = vector.multi_reduction <add>, %201, %cst_65 [1] : vector<8x16xf32> to vector<8xf32>
    %203 = vector.shape_cast %202 : vector<8xf32> to vector<8x1xf32>
    %cst_66 = arith.constant 1.600000e+01 : f32
    %204 = vector.broadcast %cst_66 : f32 to vector<8x1xf32>
    %205 = arith.divf %203, %204 : vector<8x1xf32>
    %206 = arith.mulf %201, %201 : vector<8x16xf32>
    %cst_67 = arith.constant dense<0.000000e+00> : vector<8xf32>
    %207 = vector.multi_reduction <add>, %206, %cst_67 [1] : vector<8x16xf32> to vector<8xf32>
    %208 = vector.shape_cast %207 : vector<8xf32> to vector<8x1xf32>
    %cst_68 = arith.constant 1.600000e+01 : f32
    %209 = vector.broadcast %cst_68 : f32 to vector<8x1xf32>
    %210 = arith.divf %208, %209 : vector<8x1xf32>
    %211 = arith.mulf %205, %205 : vector<8x1xf32>
    %212 = arith.subf %210, %211 : vector<8x1xf32>
    %213 = vector.broadcast %205 : vector<8x1xf32> to vector<8x16xf32>
    %214 = arith.subf %201, %213 : vector<8x16xf32>
    %cst_69 = arith.constant 9.99999974E-6 : f32
    %215 = vector.broadcast %cst_69 : f32 to vector<8x1xf32>
    %216 = arith.addf %212, %215 : vector<8x1xf32>
    %217 = math.rsqrt %216 : vector<8x1xf32>
    %218 = vector.broadcast %217 : vector<8x1xf32> to vector<8x16xf32>
    %219 = arith.mulf %214, %218 : vector<8x16xf32>
    %220 = vector.broadcast %7 : vector<1x16xf32> to vector<8x16xf32>
    %221 = arith.mulf %219, %220 : vector<8x16xf32>
    %222 = vector.broadcast %8 : vector<1x16xf32> to vector<8x16xf32>
    %223 = arith.addf %221, %222 : vector<8x16xf32>
    %c0_70 = arith.constant 0 : index
    %c0_71 = arith.constant 0 : index
    %c0_72 = arith.constant 0 : index
    %224 = vector.load %arg5[%c0_70, %c0_71, %c0_72] : memref<1x8x16xf32, #tpu.memory_space<vmem>>, vector<1x8x16xf32>
    %225 = vector.shape_cast %224 : vector<1x8x16xf32> to vector<8x16xf32>
    %226 = vector.shape_cast %223 : vector<8x16xf32> to vector<1x8x16xf32>
    tpu.vector_store %arg5[%c0_70, %c0_71, %c0_72], %226 {strides = array<i32>} : memref<1x8x16xf32, #tpu.memory_space<vmem>>, vector<1x8x16xf32>,
    return
  }
  func.func @transform_0(%arg0: i32) -> (i32, i32, i32) {
    %c0_i32 = arith.constant 0 : i32
    %c0_i32_0 = arith.constant 0 : i32
    %c0_i32_1 = arith.constant 0 : i32
    return %arg0, %c0_i32, %c0_i32_0 : i32, i32, i32
  }
  func.func @transform_1(%arg0: i32) -> (i32, i32) {
    %c0_i32 = arith.constant 0 : i32
    %c0_i32_0 = arith.constant 0 : i32
    %c0_i32_1 = arith.constant 0 : i32
    return %c0_i32, %c0_i32_0 : i32, i32
  }
  func.func @transform_2(%arg0: i32) -> (i32, i32) {
    %c0_i32 = arith.constant 0 : i32
    %c0_i32_0 = arith.constant 0 : i32
    %c0_i32_1 = arith.constant 0 : i32
    return %c0_i32, %c0_i32_0 : i32, i32
  }
  func.func @transform_3(%arg0: i32) -> (i32, i32) {
    %c0_i32 = arith.constant 0 : i32
    %c0_i32_0 = arith.constant 0 : i32
    %c0_i32_1 = arith.constant 0 : i32
    return %c0_i32, %c0_i32_0 : i32, i32
  }
  func.func @transform_4(%arg0: i32) -> (i32, i32, i32) {
    %c0_i32 = arith.constant 0 : i32
    %c0_i32_0 = arith.constant 0 : i32
    %c0_i32_1 = arith.constant 0 : i32
    return %arg0, %c0_i32, %c0_i32_0 : i32, i32, i32
  }
}

</mosaic_0001>

<bundles_post_ra>
// kernel: tpu_custom_call.1
= control target key start
LH: loop header
LB: loop body
LE: loop exit
PB: predicated region body
PF: predicated region fallthrough
CT: control target
= control target key end

     0   :  { %9 = vsyncpa [#allocation3], 0  ;;  %s2190_s0 = inlined_call_operand.vmem [shape: f32[8,8,16], index: 0, kind: input, shape index: {}]   ;;  %s2191_s1 = inlined_call_operand.vmem [shape: f32[16,64], index: 1, kind: input, shape index: {}]   ;;  %s2192_s2 = inlined_call_operand.vmem [shape: f32[96,16], index: 2, kind: input, shape index: {}]   ;;  %s2193_s3 = inlined_call_operand.vmem [shape: f32[8,64], index: 3, kind: input, shape index: {}]   ;;  %s2194_s4 = inlined_call_operand.hbm [shape: f32[8,8,16], index: 4, kind: output, shape index: {}]  }
   0x1   :  { %11 = vsyncpa [#allocation3 + $0x1], 0  ;;  %s1901_s15 = smov 0   ;;  %s1903_s16 = smov 0  }
   0x2   :  { %s1905_s17 = smov 0   ;;  %s1907_s18 = smov 0  }
   0x3 LB: > { %s1922_s19 = sadd.s32 4294967295, %s1867_s18   ;;  %s1558_s20 = sadd.s32 4294967294, %s1867_s18   ;;  %s1867_s18 = sphi %s1907_s18, %s2200_s18   ;;  %s1863_s17 = sphi %s1905_s17, %s2199_s17   ;;  %s1859_s16 = sphi %s1903_s16, %s2198_s16   ;;  %s1855_s15 = sphi %s1901_s15, %s2197_s15  }
   0x4   : > { %s1926_s21 = sadd.s32 1, %s1867_s18   ;;  %s113_s22 = sadd.s32 1, %s1863_s17 }
   0x5   : > { %s110_s23 = ssub.s32 %s1867_s18, %s1926_s21  ;;  %p123_p0 = scmp.ne.s32.totalorder %s1863_s17, %s1859_s16 }
   0x6   : > { %p111_p1 = scmp.eq.s32.totalorder %s110_s23, 0  ;;  %p124_p2 = scmp.eq.s32.totalorder %s1922_s19, 7 }
   0x7   : > { %p129_p3 = scmp.ne.s32.totalorder %s1859_s16, %s1855_s15  ;;  %p130_p4 = scmp.eq.s32.totalorder %s1558_s20, 7 }
   0x8   : > { %s1937_s24 = scalar_select %p111_p1, %s1863_s17, %s113_s22  }
   0x9   : > { %p1939_p5 = por %p124_p2, %p123_p0  ;;  %p1943_p6 = por %p130_p4, %p129_p3 }
   0xa   : > { %p1561_p7 = scmp.ge.s32.totalorder %s1867_s18, 1  ;;  %p164_p8 = scmp.lt.s32.totalorder %s1867_s18, 9 }
   0xc   : > { %p165_p9 = pnand %p1561_p7, %p164_p8 }
   0xd   : > { %v195_v0 = vld [vmem:[%s2191_s1] sm:$0xff] (!%p165_p9)  ;;  %v196_v1 = vld [vmem:[%s2191_s1 + $0x8] sm:$0xff] (!%p165_p9)  ;;  %p189_p10 = scmp.lt.s32.totalorder (!%p165_p9), %s1922_s19, 7  ;;  %v1869_v2 = vmov (!%p165_p9), 0.0|0.0   ;;  %vm1870_vm0 = vmmov (!%p165_p9), 0   ;;  %v1871_v4 = vmov (!%p165_p9), 0.0   ;;  %v197_v6 = vlaneseq (!%p165_p9) }
   0xe   : > { %168 = sbr.rel (%p165_p9) target bundleno = 3553 (0xde1), region = 36  ;;  %1713 = vmatprep.subr.bf16.mxu0 (!%p165_p9), %v1869_v2  ;;  %v1714_v3 = vpack.c.bf16 (!%p165_p9), %v196_v1, %v195_v0  ;;  %1628 = vmatprep.mubr.msk.f32.mxu0 (!%p165_p9), %vm1870_vm0, %v1871_v4  ;;  %vm201_vm1 = vcmask (!%p165_p9), 130048   ;;  %v1979_v9 = vld [vmem:[%s2193_s3] sm:$0xff] (!%p165_p9)  ;;  %s1872_s12 = smov (!%p165_p9), 112   ;;  %vm355_vm3 = vcmask (!%p165_p9), 64512   ;;  %v646_v50 = vld [vmem:[%s2192_s2 + $0x10] sm:$0xff] (!%p165_p9) }
   0xf   : > { %1631 = vmatprep.subr.mxu1 (!%p165_p9), %v1871_v4  ;;  %1633 = vmatprep.mubr.msk.f32.mxu1 (!%p165_p9), %vm1870_vm0, %v1871_v4  ;;  %v1973_v7 = vshrl.u32 (!%p165_p9), %v197_v6, 7  ;;  %v1999_v15 = vand.u32 (!%p165_p9), 127, %v197_v6  ;;  %s1873_s13 = smov (!%p165_p9), 96   ;;  %v647_v51 = vld [vmem:[%s2192_s2 + $0x18] sm:$0xff] (!%p165_p9)  ;;  %s1584_s7 = sshll.u32 (!%p165_p9), %s1922_s19, 7 }
  0x10   : > { %1715 = vmatpush3.bf16.msra.mxu0 (!%p165_p9), %v1714_v3  ;;  %v1717_v52 = vpack.c.bf16 (!%p165_p9), %v647_v51, %v646_v50  ;;  %s1875_s14 = smov (!%p165_p9), [#allocation2]  }
  0x11   : > { %1636 = vmatprep.subr.mxu0 (!%p165_p9), %v1871_v4  ;;  %v199_v8 = vsub.s32 (!%p165_p9), 0, %v1973_v7  ;;  %vm279_vm2 = vcmp.le.s32.totalorder (!%p165_p9), %v1999_v15, %v1973_v7  ;;  %v458_v62 = vsub.s32 (!%p165_p9), 4, %v1973_v7  ;;  %v463_v63 = vsub.s32 (!%p165_p9), 5, %v1973_v7  ;;  %s1809_s20 = sshll.u32 (!%p165_p9), %s1875_s14, 4  ;;  %s1810_s20 = int_to_ptr.vmem [resolvable:$false] %s1809_s20 }
  0x12   : > { %s1811_s22 = scalar_lea.vmem (!%p165_p9), %s1810_s20, 256 }
  0x13   : > { %v200_v10 = vrot.slane (!%p165_p9), %v1979_v9, %v199_v8  ;;  %v2036_v0 = vrot.slane (!%p165_p9), %v1979_v9, %v458_v62  ;;  %v2039_v6 = vrot.slane (!%p165_p9), %v1979_v9, %v463_v63  ;;  %v973_v62 = vld [vmem:[%s2192_s2 + $0x28] sm:$0xff] (!%p165_p9) }
  0x15   : > { %s190_s5 = scalar_select %p189_p10, %s1922_s19, 7 }
  0x17   : > { %s1563_s6 = sshll.u32 %s190_s5, 3  ;;  %s1874_s5 = smov 80  }
  0x18   : > { %s192_s9 = scalar_lea.vmem %s2190_s0, %s1563_s6 }
  0x19   : > { %v1967_v5 = vld [vmem:[%s192_s9] sm:$0xff] }
  0x1a   : > { %1629 = vmatmul.mubr.msk.f32.vlgmr.msra.gmra.mrb[0].mxu0 %vm201_vm1, %v1967_v5 }
  0x1b   : > { %1638 = vmatprep.mubr.msk.f32.mxu0 %vm1870_vm0, %v1871_v4 }
  0xed   : > { %v271_v11 = vpop.f32.mrb[0].mxu0 }
  0xee   : > { %v1982_v12 = vadd.f32 %v271_v11, %v200_v10  ;;  %v1630_v13 = vpop.f32.mrb[1].mxu0 }
  0xf0   : > { %468 = vrot.lane.b32.xlu0 %v1982_v12, %s1872_s12  ;;  %1632 = vmatpush3.xpose.msk.msra.mxu1 %vm201_vm1, %v1982_v12  ;;  %s2147_s12 = scalar_lea.hbm %s2194_s4, %s1584_s7 }
  0xf1   : > { %1637 = vmatpush3.msra.mxu0 %v1982_v12  ;;  %1641 = vmatprep.subr.mxu1 %v1871_v4 }
  0xf2   : > { %1646 = vmatprep.subr.mxu0 %v1871_v4 }
  0xf3   : > { %1634 = vmatmul.mubr.msk.f32.vlgmr.msra.gmra.mrb[0].mxu1 %vm201_vm1, %v1982_v12 }
  0xf4   : > { %1643 = vmatprep.mubr.msk.f32.mxu1 %vm1870_vm0, %v1871_v4 }
 0x162   : > { %v469_v14 = vpop.permute.xlu0 %468 }
 0x163   : > { %1642 = vmatpush3.xpose.msk.msra.mxu1 %vm201_vm1, %v469_v14 }
 0x164   : > { %1716 = vmatprep.subr.bf16.mxu1 %v1869_v2 }
 0x166   : > { %1644 = vmatmul.mubr.msk.f32.vlgmr.msra.gmra.mrb[2].mxu1 %vm201_vm1, %v469_v14 }
 0x167   : > { %1655 = vmatprep.mubr.msk.f32.mxu1 %vm1870_vm0, %v1871_v4  ;;  %1718 = vmatpush3.bf16.msra.mxu1 %v1717_v52 }
 0x168   : > { %1665 = vmatprep.subr.mxu1 %v1871_v4 }
 0x1c6   : > { %v349_v16 = vpop.f32.mrb[0].mxu1 }
 0x1c7   : > { %v353_v17 = vmul.f32 0.25, %v349_v16  ;;  %v1635_v18 = vpop.f32.mrb[1].mxu1 }
 0x1c9   : > { %v354_v19 = vsel %vm279_vm2, %v353_v17, -1e+30 }
 0x1ca   : > { %v356_v20 = vsel %vm355_vm3, %v354_v19, -inf }
 0x1cb   : > { %357 = vmax.xlane.f32.xlu0 %v356_v20 }
 0x239   : > { %v538_v21 = vpop.f32.mrb[2].mxu1 }
 0x23a   : > { %v542_v22 = vmul.f32 0.25, %v538_v21  ;;  %v1645_v23 = vpop.f32.mrb[3].mxu1 }
 0x23c   : > { %v543_v24 = vsel %vm279_vm2, %v542_v22, -1e+30 }
 0x23d   : > { %v544_v25 = vsel %vm355_vm3, %v543_v24, -inf }
 0x23e   : > { %545 = vmax.xlane.f32.xlu1 %v544_v25  ;;  %v467_v25 = vld [vmem:[%s2192_s2 + $0x8] sm:$0xff] }
 0x258   : > { %v358_v26 = vpop.xlane.xlu0 %357 }
 0x259   : > { %v359_v27 = vsub.f32 %v354_v19, %v358_v26 }
 0x25b   : > { %v360_v28 = vmul.f32 1.442695, %v359_v27 }
 0x25d   : > { %1779 = vpow2.f32 %v360_v28 }
 0x267   : > { %v1780_v29 = vpop.eup %1779 }
 0x268   : > { %v362_v30 = vsel %vm355_vm3, %v1780_v29, 0.0 }
 0x269   : > { %363 = vadd.xlane.f32.xlu1 %v362_v30 }
 0x2cb   : > { %v546_v31 = vpop.xlane.xlu1 %545 }
 0x2cc   : > { %v547_v32 = vsub.f32 %v543_v24, %v546_v31  ;;  %v466_v24 = vld [vmem:[%s2192_s2] sm:$0xff] }
 0x2cd   : > { %v1720_v26 = vpack.c.bf16 %v467_v25, %v466_v24 }
 0x2ce   : > { %v548_v33 = vmul.f32 1.442695, %v547_v32 }
 0x2d0   : > { %1781 = vpow2.f32 %v548_v33 }
 0x2da   : > { %v1782_v34 = vpop.eup %1781 }
 0x2db   : > { %v550_v35 = vsel %vm355_vm3, %v1782_v34, 0.0 }
 0x2dc   : > { %551 = vadd.xlane.f32.xlu1 %v550_v35 }
 0x2f6   : > { %v364_v36 = vpop.xlane.xlu1 %363 }
 0x2f7   : > { %1783 = vrcp.f32 %v364_v36 }
 0x301   : > { %v1784_v37 = vpop.eup %1783 }
 0x302   : > { %v366_v38 = vmul.f32 %v1784_v37, %v1780_v29 }
 0x304   : > { %1639 = vmatmul.mubr.msk.f32.vlgmr.msra.gmra.mrb[2].mxu0 %vm355_vm3, %v366_v38 }
 0x305   : > { %1647 = vmatpush3.msra.mxu0 %v469_v14  ;;  %1648 = vmatprep.mubr.msk.f32.mxu0 %vm1870_vm0, %v1871_v4 }
 0x306   : > { %1719 = vmatprep.subr.bf16.mxu0 %v1869_v2 }
 0x369   : > { %v552_v39 = vpop.xlane.xlu1 %551 }
 0x36a   : > { %1785 = vrcp.f32 %v552_v39 }
 0x374   : > { %v1786_v40 = vpop.eup %1785 }
 0x375   : > { %v554_v41 = vmul.f32 %v1786_v40, %v1782_v34 }
 0x377   : > { %1649 = vmatmul.mubr.msk.f32.vlgmr.msra.gmra.mrb[4].mxu0 %vm355_vm3, %v554_v41 }
 0x378   : > { %1662 = vmatprep.mubr.msk.f32.mxu0 %vm1870_vm0, %v1871_v4  ;;  %1721 = vmatpush3.bf16.msra.mxu0 %v1720_v26 }
 0x379   : > { %1670 = vmatprep.subr.mxu0 %v1871_v4 }
 0x3d7   : > { %v436_v42 = vpop.f32.mrb[2].mxu0 }
 0x3d8   : > { %v1640_v43 = vpop.f32.mrb[3].mxu0  ;;  %v437_v53 = vadd.f32 %v436_v42, %v1967_v5 }
 0x3da   : > { %v440_v54 = vsel %vm201_vm1, %v437_v53, 0.0  ;;  %v445_v22 = vmul.f32 %v437_v53, %v437_v53 }
 0x3dc   : > { %v446_v23 = vsel %vm201_vm1, %v445_v22, 0.0 }
 0x44a   : > { %v625_v44 = vpop.f32.mrb[4].mxu0 }
 0x44b   : > { %v626_v45 = vadd.f32 %v625_v44, %v1967_v5  ;;  %v1650_v46 = vpop.f32.mrb[5].mxu0 }
 0x44d   : > { %v629_v47 = vsel %vm201_vm1, %v626_v45, 0.0  ;;  %v633_v48 = vmul.f32 %v626_v45, %v626_v45 }
 0x44e   : > { %630 = vadd.xlane.f32.xlu1 %v629_v47 }
 0x44f   : > { %v634_v49 = vsel %vm201_vm1, %v633_v48, 0.0 }
 0x452   : > { %635 = vadd.xlane.f32.xlu1 %v634_v49 }
 0x463   : > { %794 = vrot.lane.b32.xlu1 %v1982_v12, %s1873_s13 }
 0x487   : > { %441 = vadd.xlane.f32.xlu1 %v440_v54 }
 0x4db   : > { %v631_v55 = vpop.xlane.xlu1 %630 }
 0x4dc   : > { %v632_v56 = vmul.f32 0.0625, %v631_v55 }
 0x4de   : > { %v638_v58 = vmul.f32 %v632_v56, %v632_v56  ;;  %v640_v1 = vsub.f32 %v626_v45, %v632_v56 }
 0x4df   : > { %v636_v57 = vpop.xlane.xlu1 %635 }
 0x4e0   : > { %v637_v59 = vmul.f32 0.0625, %v636_v57 }
 0x4e2   : > { %v639_v60 = vsub.f32 %v637_v59, %v638_v58 }
 0x4e3   : > { %v795_v13 = vpop.permute.xlu1 %794 }
 0x4e4   : > { %v641_v61 = vadd.f32 1e-05, %v639_v60 }
 0x4e6   : > { %1787 = vrsqrt.f32 %v641_v61  ;;  %v972_v61 = vld [vmem:[%s2192_s2 + $0x20] sm:$0xff] }
 0x4e7   : > { %v1723_v63 = vpack.c.bf16 %v973_v62, %v972_v61 }
 0x4f0   : > { %v1788_v3 = vpop.eup %1787 }
 0x4f1   : > { %v643_v8 = vmul.f32 %v1788_v3, %v640_v1 }
 0x4f3   : > { %v644_v10 = vmul.f32 %v643_v8, %v2036_v0 }
 0x4f5   : > { %v645_v11 = vadd.f32 %v644_v10, %v2039_v6 }
 0x4f7   : > { %1656 = vmatmul.mubr.msk.f32.vlgmr.msra.gmra.mrb[4].mxu1 %vm201_vm1, %v645_v11 }
 0x4f8   : > { %1666 = vmatpush3.xpose.msk.msra.mxu1 %vm201_vm1, %v795_v13  ;;  %1667 = vmatprep.mubr.msk.f32.mxu1 %vm1870_vm0, %v1871_v4 }
 0x4f9   : > { %1722 = vmatprep.subr.bf16.mxu1 %v1869_v2 }
 0x4fb   : > { %1668 = vmatmul.mubr.msk.f32.vlgmr.msra.gmra.mrb[6].mxu1 %vm201_vm1, %v795_v13 }
 0x4fc   : > { %1679 = vmatprep.mubr.msk.f32.mxu1 %vm1870_vm0, %v1871_v4  ;;  %1724 = vmatpush3.bf16.msra.mxu1 %v1723_v63 }
 0x4fd   : > { %1687 = vmatprep.subr.mxu1 %v1871_v4 }
 0x514   : > { %v442_v27 = vpop.xlane.xlu1 %441 }
 0x515   : > { %v444_v29 = vmul.f32 0.0625, %v442_v27 }
 0x517   : > { %v450_v33 = vmul.f32 %v444_v29, %v444_v29  ;;  %v452_v39 = vsub.f32 %v437_v53, %v444_v29 }
 0x5ca   : > { %v717_v14 = vpop.f32.mrb[4].mxu1 }
 0x5cb   : > { %v1657_v16 = vpop.f32.mrb[5].mxu1 }
 0x5ce   : > { %v864_v17 = vpop.f32.mrb[6].mxu1 }
 0x5cf   : > { %v868_v18 = vmul.f32 0.25, %v864_v17  ;;  %v1669_v19 = vpop.f32.mrb[7].mxu1 }
 0x5d1   : > { %v869_v20 = vsel %vm279_vm2, %v868_v18, -1e+30 }
 0x5d2   : > { %v870_v21 = vsel %vm355_vm3, %v869_v20, -inf }
 0x5d3   : > { %871 = vmax.xlane.f32.xlu0 %v870_v21 }
 0x5d7   : > { %447 = vadd.xlane.f32.xlu0 %v446_v23 }
 0x660   : > { %v872_v28 = vpop.xlane.xlu0 %871 }
 0x661   : > { %v873_v30 = vsub.f32 %v869_v20, %v872_v28 }
 0x663   : > { %v874_v31 = vmul.f32 1.442695, %v873_v30 }
 0x664   : > { %v448_v32 = vpop.xlane.xlu0 %447 }
 0x665   : > { %1789 = vpow2.f32 %v874_v31  ;;  %v449_v34 = vmul.f32 0.0625, %v448_v32 }
 0x667   : > { %v451_v35 = vsub.f32 %v449_v34, %v450_v33 }
 0x669   : > { %v453_v36 = vadd.f32 1e-05, %v451_v35 }
 0x66b   : > { %1791 = vrsqrt.f32 %v453_v36 }
 0x66f   : > { %v1790_v37 = vpop.eup %1789 }
 0x670   : > { %v876_v38 = vsel %vm355_vm3, %v1790_v37, 0.0 }
 0x671   : > { %877 = vadd.xlane.f32.xlu0 %v876_v38  ;;  %v1227_v38 = vld [vmem:[%s2192_s2 + $0x38] sm:$0xff] }
 0x675   : > { %v1792_v40 = vpop.eup %1791 }
 0x676   : > { %v455_v41 = vmul.f32 %v1792_v40, %v452_v39 }
 0x678   : > { %v460_v42 = vmul.f32 %v2036_v0, %v455_v41 }
 0x67a   : > { %v465_v43 = vadd.f32 %v2039_v6, %v460_v42 }
 0x67c   : > { %1663 = vmatmul.mubr.msk.f32.vlgmr.msra.gmra.mrb[6].mxu0 %vm201_vm1, %v465_v43 }
 0x67d   : > { %1671 = vmatpush3.msra.mxu0 %v795_v13  ;;  %1672 = vmatprep.mubr.msk.f32.mxu0 %vm1870_vm0, %v1871_v4 }
 0x67e   : > { %1682 = vmatprep.subr.mxu0 %v1871_v4 }
 0x687   : > { %1048 = vrot.lane.b32.xlu0 %v1982_v12, %s1874_s5  ;;  %s186_s5 = sand.u32 1, %s1859_s16  }
 0x688   : > { %s1562_s6 = sshll.u32 %s186_s5, 3  ;;  %s1486_s13 = scalar_lea.sflag [#allocation3], %s186_s5 }
 0x689   : > { %s188_s8 = scalar_lea.vmem [#allocation2], %s1562_s6 }
 0x68a   : > { %s1499_s9 = sshll.u32 %s188_s8, 4  ;;  %s2149_s9 = int_to_ptr.vmem [resolvable:$true] %s1499_s9 }
 0x68b   : > { %s1805_s19 = scalar_lea.vmem %s2149_s9, 128  ;;  %p1812_p0 = scmp.lt.s32.totalorder %s2149_s9, %s1810_s20 }
 0x68c   : > { %p1806_p11 = scmp.ne.s32.totalorder %s2149_s9, %s1805_s19  ;;  %p1813_p1 = scmp.lt.s32.totalorder %s1811_s22, %s1805_s19 }
 0x68e   : > { %p1807_p12 = pnand %p1806_p11, %p1939_p5  ;;  %p1814_p2 = por %p1813_p1, %p1812_p0 }
 0x690   : > { %p1808_p13 = pneg %p1807_p12 }
 0x692   : > { %p1815_p3 = pnand %p1814_p2, %p1808_p13 }
 0x6fe   : > { %v878_v44 = vpop.xlane.xlu0 %877 }
 0x6ff   : > { %1793 = vrcp.f32 %v878_v44 }
 0x702   : > { %v1049_v47 = vpop.permute.xlu0 %1048 }
 0x709   : > { %v1794_v45 = vpop.eup %1793 }
 0x70a   : > { %v880_v46 = vmul.f32 %v1794_v45, %v1790_v37  ;;  %v1226_v37 = vld [vmem:[%s2192_s2 + $0x30] sm:$0xff] }
 0x70b   : > { %v1726_v39 = vpack.c.bf16 %v1227_v38, %v1226_v37 }
 0x70c   : > { %1673 = vmatmul.mubr.msk.f32.vlgmr.msra.gmra.mrb[8].mxu0 %vm355_vm3, %v880_v46 }
 0x70d   : > { %1683 = vmatpush3.xpose.msk.msra.mxu0 %vm201_vm1, %v1049_v47  ;;  %1684 = vmatprep.mubr.msk.f32.mxu0 %vm1870_vm0, %v1871_v4 }
 0x70e   : > { %1725 = vmatprep.subr.bf16.mxu0 %v1869_v2 }
 0x710   : > { %1685 = vmatmul.mubr.msk.f32.vlgmr.msra.gmra.mrb[10].mxu0 %vm201_vm1, %v1049_v47 }
 0x711   : > { %1696 = vmatprep.mubr.msk.f32.mxu0 %vm1870_vm0, %v1871_v4  ;;  %1727 = vmatpush3.bf16.msra.mxu0 %v1726_v39 }
 0x712   : > { %1731 = vmatprep.subr.bf16.mxu0 %v1869_v2 }
 0x74f   : > { %v790_v12 = vpop.f32.mrb[6].mxu0 }
 0x750   : > { %v791_v48 = vadd.f32 %v790_v12, %v717_v14  ;;  %v1664_v49 = vpop.f32.mrb[7].mxu0 }
 0x7df   : > { %v951_v50 = vpop.f32.mrb[8].mxu0 }
 0x7e0   : > { %v952_v51 = vadd.f32 %v951_v50, %v1967_v5  ;;  %v1674_v52 = vpop.f32.mrb[9].mxu0  ;;  %v1308_v50 = vld [vmem:[%s2192_s2 + $0x48] sm:$0xff] }
 0x7e1   : > { %v1304_v52 = vsub.s32 1, %v1973_v7 }
 0x7e2   : > { %v955_v53 = vsel %vm201_vm1, %v952_v51, 0.0  ;;  %v959_v54 = vmul.f32 %v952_v51, %v952_v51 }
 0x7e3   : > { %956 = vadd.xlane.f32.xlu1 %v955_v53  ;;  %v1118_v55 = vpop.f32.mrb[10].mxu0  ;;  %v1305_v53 = vrot.slane %v1979_v9, %v1304_v52 }
 0x7e4   : > { %v1122_v56 = vmul.f32 0.25, %v1118_v55  ;;  %v1686_v57 = vpop.f32.mrb[11].mxu0  ;;  %v960_v58 = vsel %vm201_vm1, %v959_v54, 0.0 }
 0x7e6   : > { %v1123_v59 = vsel %vm279_vm2, %v1122_v56, -1e+30 }
 0x7e7   : > { %961 = vadd.xlane.f32.xlu1 %v960_v58  ;;  %v1124_v60 = vsel %vm355_vm3, %v1123_v59, -inf  ;;  %v1310_v58 = vld [vmem:[%s2192_s2 + $0x58] sm:$0xff] }
 0x7e8   : > { %1125 = vmax.xlane.f32.xlu0 %v1124_v60  ;;  %v1313_v60 = vsub.s32 2, %v1973_v7 }
 0x7ea   : > { %v1314_v61 = vrot.slane %v1979_v9, %v1313_v60 }
 0x870   : > { %v957_v1 = vpop.xlane.xlu1 %956 }
 0x871   : > { %v958_v3 = vmul.f32 0.0625, %v957_v1 }
 0x873   : > { %v964_v8 = vmul.f32 %v958_v3, %v958_v3  ;;  %v966_v19 = vsub.f32 %v952_v51, %v958_v3 }
 0x874   : > { %v962_v15 = vpop.xlane.xlu1 %961 }
 0x875   : > { %v963_v10 = vmul.f32 0.0625, %v962_v15  ;;  %v1126_v11 = vpop.xlane.xlu0 %1125  ;;  %v1391_v15 = vsub.s32 3, %v1973_v7 }
 0x876   : > { %v1127_v13 = vsub.f32 %v1123_v59, %v1126_v11 }
 0x877   : > { %v965_v14 = vsub.f32 %v963_v10, %v964_v8  ;;  %v1392_v8 = vrot.slane %v1979_v9, %v1391_v15 }
 0x878   : > { %v1128_v16 = vmul.f32 1.442695, %v1127_v13 }
 0x879   : > { %v967_v17 = vadd.f32 1e-05, %v965_v14 }
 0x87a   : > { %1795 = vpow2.f32 %v1128_v16 }
 0x87b   : > { %1797 = vrsqrt.f32 %v967_v17 }
 0x884   : > { %v1796_v18 = vpop.eup %1795 }
 0x885   : > { %v1798_v20 = vpop.eup %1797  ;;  %v1130_v21 = vsel %vm355_vm3, %v1796_v18, 0.0 }
 0x886   : > { %v969_v22 = vmul.f32 %v1798_v20, %v966_v19  ;;  %1131 = vadd.xlane.f32.xlu1 %v1130_v21 }
 0x888   : > { %v970_v23 = vmul.f32 %v969_v22, %v2036_v0 }
 0x88a   : > { %v971_v24 = vadd.f32 %v970_v23, %v2039_v6 }
 0x88c   : > { %1680 = vmatmul.mubr.msk.f32.vlgmr.msra.gmra.mrb[8].mxu1 %vm201_vm1, %v971_v24 }
 0x88d   : > { %1688 = vmatpush3.msra.mxu1 %v1049_v47  ;;  %1689 = vmatprep.mubr.msk.f32.mxu1 %vm1870_vm0, %v1871_v4 }
 0x88e   : > { %1728 = vmatprep.subr.bf16.mxu1 %v1869_v2  ;;  %v1307_v2 = vld [vmem:[%s2192_s2 + $0x40] sm:$0xff] }
 0x88f   : > { %v1729_v51 = vpack.c.bf16 %v1308_v50, %v1307_v2 }
 0x913   : > { %v1132_v25 = vpop.xlane.xlu1 %1131 }
 0x914   : > { %1799 = vrcp.f32 %v1132_v25 }
 0x91e   : > { %v1800_v26 = vpop.eup %1799 }
 0x91f   : > { %v1134_v27 = vmul.f32 %v1800_v26, %v1796_v18 }
 0x921   : > { %1690 = vmatmul.mubr.msk.f32.vlgmr.msra.gmra.mrb[10].mxu1 %vm355_vm3, %v1134_v27 }
 0x922   : > { %1703 = vmatprep.mubr.msk.f32.mxu1 %vm1870_vm0, %v1871_v4  ;;  %1730 = vmatpush3.bf16.msra.mxu1 %v1729_v51 }
 0x95f   : > { %v1043_v28 = vpop.f32.mrb[8].mxu1 }
 0x960   : > { %v1047_v29 = vadd.f32 %v1043_v28, %v791_v48  ;;  %v1681_v30 = vpop.f32.mrb[9].mxu1 }
 0x9f4   : > { %v1205_v31 = vpop.f32.mrb[10].mxu1 }
 0x9f5   : > { %v1206_v32 = vadd.f32 %v1205_v31, %v1967_v5  ;;  %v1691_v33 = vpop.f32.mrb[11].mxu1 }
 0x9f7   : > { %v1209_v34 = vsel %vm201_vm1, %v1206_v32, 0.0  ;;  %v1213_v35 = vmul.f32 %v1206_v32, %v1206_v32 }
 0x9f8   : > { %1210 = vadd.xlane.f32.xlu1 %v1209_v34 }
 0x9f9   : > { %v1214_v36 = vsel %vm201_vm1, %v1213_v35, 0.0 }
 0x9fc   : > { %1215 = vadd.xlane.f32.xlu1 %v1214_v36 }
 0xa85   : > { %v1211_v5 = vpop.xlane.xlu1 %1210 }
 0xa86   : > { %v1212_v40 = vmul.f32 0.0625, %v1211_v5 }
 0xa88   : > { %v1218_v42 = vmul.f32 %v1212_v40, %v1212_v40  ;;  %v1220_v46 = vsub.f32 %v1206_v32, %v1212_v40 }
 0xa89   : > { %v1216_v41 = vpop.xlane.xlu1 %1215 }
 0xa8a   : > { %v1217_v43 = vmul.f32 0.0625, %v1216_v41 }
 0xa8c   : > { %v1219_v44 = vsub.f32 %v1217_v43, %v1218_v42 }
 0xa8e   : > { %v1221_v45 = vadd.f32 1e-05, %v1219_v44 }
 0xa90   : > { %1801 = vrsqrt.f32 %v1221_v45 }
 0xa9a   : > { %v1802_v47 = vpop.eup %1801 }
 0xa9b   : > { %v1223_v12 = vmul.f32 %v1802_v47, %v1220_v46 }
 0xa9d   : > { %v1224_v48 = vmul.f32 %v1223_v12, %v2036_v0 }
 0xa9f   : > { %v1225_v49 = vadd.f32 %v1224_v48, %v2039_v6 }
 0xaa1   : > { %1697 = vmatmul.mubr.msk.f32.vlgmr.msra.gmra.mrb[12].mxu0 %vm201_vm1, %v1225_v49 }
 0xaa2   : > { %1710 = vmatprep.mubr.msk.f32.mxu0 %vm1870_vm0, %v1871_v4  ;;  %v1309_v4 = vld [vmem:[%s2192_s2 + $0x50] sm:$0xff] }
 0xaa3   : > { %v1732_v59 = vpack.c.bf16 %v1310_v58, %v1309_v4 }
 0xaa5   : > { %1733 = vmatpush3.bf16.msra.mxu0 %v1732_v59 }
 0xb74   : > { %v1297_v54 = vpop.f32.mrb[12].mxu0 }
 0xb75   : > { %v1301_v55 = vadd.f32 %v1297_v54, %v1047_v29  ;;  %v1698_v56 = vpop.f32.mrb[13].mxu0 }
 0xb77   : > { %v1306_v57 = vadd.f32 %v1305_v53, %v1301_v55 }
 0xb79   : > { %1704 = vmatmul.mubr.msk.f32.vlgmr.msra.gmra.mrb[12].mxu1 %vm201_vm1, %v1306_v57 }
 0xc4c   : > { %v1384_v62 = vpop.f32.mrb[12].mxu1 }
 0xc4d   : > { %v1385_v63 = vadd.f32 %v1384_v62, %v1314_v61  ;;  %v1705_v1 = vpop.f32.mrb[13].mxu1 }
 0xc4f   : > { %v1388_v3 = vmax.f32 %v1385_v63, 0.0 }
 0xc51   : > { %1711 = vmatmul.mubr.msk.f32.vlgmr.msra.gmra.mrb[14].mxu0 %vm201_vm1, %v1388_v3 }
 0xd24   : > { %v1462_v10 = vpop.f32.mrb[14].mxu0 }
 0xd25   : > { %v1463_v11 = vadd.f32 %v1462_v10, %v1392_v8  ;;  %v1712_v13 = vpop.f32.mrb[15].mxu0 }
 0xd27   : > { %v1466_v14 = vadd.f32 %v1463_v11, %v1306_v57 }
 0xd29   : > { %v1467_v16 = vsel %vm201_vm1, %v1466_v14, 0.0  ;;  %v1471_v17 = vmul.f32 %v1466_v14, %v1466_v14 }
 0xd2a   : > { %1468 = vadd.xlane.f32.xlu1 %v1467_v16 }
 0xd2b   : > { %v1472_v18 = vsel %vm201_vm1, %v1471_v17, 0.0 }
 0xd2e   : > { %1473 = vadd.xlane.f32.xlu1 %v1472_v18 }
 0xdb7   : > { %v1469_v19 = vpop.xlane.xlu1 %1468 }
 0xdb8   : > { %v1470_v20 = vmul.f32 0.0625, %v1469_v19 }
 0xdba   : > { %v1476_v22 = vmul.f32 %v1470_v20, %v1470_v20  ;;  %v1478_v24 = vsub.f32 %v1466_v14, %v1470_v20 }
 0xdbb   : > { %v1474_v21 = vpop.xlane.xlu1 %1473 }
 0xdbc   : > { %v1475_v7 = vmul.f32 0.0625, %v1474_v21 }
 0xdbe   : > { %v1477_v23 = vsub.f32 %v1475_v7, %v1476_v22 }
 0xdc0   : > { %v1479_v9 = vadd.f32 1e-05, %v1477_v23 }
 0xdc2   : > { %1803 = vrsqrt.f32 %v1479_v9 }
 0xdcc   : > { %v1804_v25 = vpop.eup %1803 }
 0xdcd   : > { %v1481_v26 = vmul.f32 %v1804_v25, %v1478_v24 }
 0xdcf   : > { %v1482_v27 = vmul.f32 %v1481_v26, %v2036_v0 }
 0xdd1   : > { %v1483_v28 = vadd.f32 %v1482_v27, %v2039_v6 }
 0xdd3   : > { %1484 = vst.msk [vmem:[%s188_s8] sm:$0xff] %vm201_vm1, %v1483_v28 }
 0xdd4   : > { %1818 = shalt.err (!%p1815_p3)
}
 0xdd5   : > { %s1819_s23 = scalar_lea.hbm %s2147_s12, 128  ;;  %s1823_s29 = scalar_lea.hbm %s2194_s4, 1024 }
 0xdd6   : > { %p1820_p4 = scmp.ne.s32.totalorder %s2147_s12, %s1819_s23  ;;  %p1824_p9 = scmp.lt.u32.totalorder %s2147_s12, %s2194_s4 }
 0xdd7   : > { %p1825_p10 = scmp.lt.u32.totalorder %s1823_s29, %s1819_s23  ;;  %p1827_p12 = scmp.lt.u32.totalorder %s1819_s23, %s2147_s12 }
 0xdd8   : > { %p1821_p7 = pnand %p1820_p4, %p1939_p5 }
 0xdd9   : > { %p1826_p11 = por %p1825_p10, %p1824_p9 }
 0xdda   : > { %p1822_p8 = pneg %p1821_p7 }
 0xddb   : > { %p1828_p13 = por %p1827_p12, %p1826_p11 }
 0xddd   : > { %p1829_p0 = pnand %p1828_p13, %p1822_p8 }
 0xddf   : > { %1832 = shalt.err (!%p1829_p0)
}
 0xde0   : > { %1734 = dma.vmem_to_hbm [thread:$0]  (%p1939_p5), %s2149_s9, 128, %s2147_s12, %s1486_s13  }
 0xde1 PF: > { %p1740_p1 = scmp.ge.s32.totalorder %s1867_s18, 2  ;;  %s1511_s6 = sand.u32 1, %s1855_s15  }
 0xde2   : > { %s1512_s7 = scalar_lea.sflag [#allocation3], %s1511_s6 }
 0xde3   : > { %p1737_p2 = pnand %p1740_p1, %p1943_p6 }
 0xde5   : > { %1850 = dma.done.wait (!%p1737_p2), %s1512_s7, 128  }
 0xde6   : > { %1852 = vsyncadd (!%p1737_p2), %s1512_s7, 4294967168  ;;  %p14_p3 = scmp.ge.s32.totalorder %s1926_s21, 10   ;;  %s2197_s15 = smov %s1859_s16 }
 0xde7   : > { %s2198_s16 = smov %s1863_s17  ;;  %s2199_s17 = smov %s1937_s24 }
 0xde8   : > { %s2200_s18 = smov %s1926_s21  ;;  %16 = sbr.rel (!%p14_p3) target bundleno = 3 (0x3), region = 71 }
 0xdef   :  { %1517 = vsyncpa [#allocation3], 1 }
 0xdf0   :  { %1519 = vsyncpa [#allocation3 + $0x1], 1 }

</bundles_post_ra>
